<compile_context>
chip_gen: v5e
topology: v5e:2x2
jax: 0.10.0
libtpu: 0.0.40
codegen_flags: <defaults>
</compile_context>

<pallas_src>
import jax
import jax.numpy as jnp
from jax.experimental import pallas as pl
from jax.experimental.pallas import tpu as pltpu

FEATURE_DIM = 50            # model feature dim (as in the PyTorch module)
SEQ_LEN = 8
PAD_DIM = 128               # lane-aligned width of each Q/K/V output segment
QKV_DIM = 3 * PAD_DIM       # fused projection output width
DEFAULT_TB = 32             # 32 * 8 = 256 rows per MXU pass (v6e/v7x-sized, /128 for v5e)


def fused_self_attention_kernel(x_ref, w_ref, b_ref, o_ref):
    """One block of TB independent sequences per grid step.

    x_ref: (TB, S, F)          unpadded input block (F = 50)
    w_ref: (F, QKV_DIM)        fused, pre-transposed [Wq*scale | Wk | Wv], each
                               segment zero-padded to 128 output columns
    b_ref: (1, QKV_DIM)        fused biases          [bq*scale | bk | bv]
    o_ref: (TB, S, F)
    """
    TB, S, F = x_ref.shape

    # (TB, 8, 50) -> (TB*8, 50): S == 8 is exactly the f32 sublane tile, so this
    # merge of leading dims is a free view (no relayout).
    x = x_ref[...].reshape(TB * S, F)

    # Single fused projection for the whole block: (TB*8, 50) @ (50, 384).
    # Padded output columns (50..127 of each segment) are exactly zero because
    # the corresponding weight columns / bias entries are zero.
    qkv = jnp.dot(x, w_ref[...], preferred_element_type=jnp.float32) + b_ref[...]

    # Slices land on 128-lane tile boundaries -> no relayout copies.
    q = qkv[:, 0:PAD_DIM].reshape(TB, S, PAD_DIM)        # scale folded into W_Q / b_Q
    k = qkv[:, PAD_DIM:2 * PAD_DIM].reshape(TB, S, PAD_DIM)
    v = qkv[:, 2 * PAD_DIM:3 * PAD_DIM].reshape(TB, S, PAD_DIM)

    # Batched scores over TB sequences: (TB, S, S). Padded q/k lanes are zero,
    # so the 128-wide contraction equals the true 50-wide one.
    s = jax.lax.dot_general(q, k, (((2,), (2,)), ((0,), (0,))),
                            preferred_element_type=jnp.float32)

    # softmax over the key axis (dim=1 of each per-sequence (S, S) score matrix).
    s = s - jnp.max(s, axis=-1, keepdims=True)
    p = jnp.exp(s)
    # Exact reciprocal keeps the ~1e-5 match with the reference;
    # approx=True (EUP vrcp) is a valid micro-opt if tolerance is relaxed.
    p = p * pl.reciprocal(jnp.sum(p, axis=-1, keepdims=True), approx=False)

    # attn @ V, batched over TB: (TB, S, S) x (TB, S, 128) -> (TB, S, 128).
    out = jax.lax.dot_general(p, v, (((2,), (1,)), ((0,), (0,))),
                              preferred_element_type=jnp.float32)

    # Store only the 50 real feature lanes (no wrapper-side slice pass over HBM).
    o_ref[...] = out[:, :, :F].astype(o_ref.dtype)


def prepare_params(wq, bq, wk, bk, wv, bv):
    """One-time parameter setup (NOT per call):
       * fold the 1/sqrt(FEATURE_DIM) score scale into W_Q / b_Q,
       * transpose PyTorch (out, in) Linear weights to (in, out),
       * zero-pad each OUTPUT segment 50 -> 128 columns (lane-aligned slices);
         the input dim stays 50 so x needs no padding at all,
       * fuse Q/K/V into a single (50, 384) weight and (1, 384) bias.
    """
    scale = 1.0 / (FEATURE_DIM ** 0.5)
    pad_cols = lambda w: jnp.pad(w, ((0, 0), (0, PAD_DIM - FEATURE_DIM)))
    pad_b = lambda b: jnp.pad(b, (0, PAD_DIM - FEATURE_DIM))

    w_qkv = jnp.concatenate(
        [pad_cols((wq * scale).T), pad_cols(wk.T), pad_cols(wv.T)], axis=1)  # (50, 384)
    b_qkv = jnp.concatenate(
        [pad_b(bq * scale), pad_b(bk), pad_b(bv)], axis=0).reshape(1, QKV_DIM)
    return w_qkv.astype(jnp.float32), b_qkv.astype(jnp.float32)


def _choose_block_batch(B):
    """TB sequences per grid step. Target TB*S = 256 MXU rows; keep >= 2 grid
    steps when possible so the batch axis can shard across both TCs on v7x."""
    tb = min(DEFAULT_TB, B)
    while tb > 1 and pl.cdiv(B, tb) < 2:
        tb //= 2
    return max(tb, 1)


@jax.jit
def self_attention(x, w_qkv, b_qkv):
    """x: (S, FEATURE_DIM) or (B, S, FEATURE_DIM) float32.
       w_qkv, b_qkv: outputs of prepare_params (fused, pre-transposed, col-padded)."""
    squeeze = x.ndim == 2
    if squeeze:
        x = x[None]
    x = x.astype(jnp.float32)
    B, S, F = x.shape

    TB = _choose_block_batch(B)
    n_blocks = pl.cdiv(B, TB)
    B_pad = n_blocks * TB
    if B_pad != B:
        # Tail block padded with zero sequences: softmax stays finite; sliced off below.
        x = jnp.pad(x, ((0, B_pad - B), (0, 0), (0, 0)))

    flops = (2 * B_pad * S * F * QKV_DIM          # fused projection
             + 2 * B_pad * S * S * PAD_DIM        # Q @ K^T
             + 2 * B_pad * S * S * PAD_DIM)       # attn @ V
    bytes_accessed = 4 * (B_pad * S * F           # input
                          + B_pad * S * F         # output
                          + w_qkv.size + b_qkv.size)

    out = pl.pallas_call(
        fused_self_attention_kernel,
        out_shape=jax.ShapeDtypeStruct((B_pad, S, F), jnp.float32),
        grid=(n_blocks,),
        in_specs=[
            pl.BlockSpec((TB, S, F), lambda b: (b, 0, 0)),             # unpadded x block
            pl.BlockSpec((FEATURE_DIM, QKV_DIM), lambda b: (0, 0)),    # resident fused weight
            pl.BlockSpec((1, QKV_DIM), lambda b: (0, 0)),              # resident fused bias
        ],
        out_specs=pl.BlockSpec((TB, S, F), lambda b: (b, 0, 0)),
        compiler_params=pltpu.CompilerParams(
            dimension_semantics=("parallel",)),     # shards batch blocks across TCs on v7x
        cost_estimate=pl.CostEstimate(
            flops=flops,
            transcendentals=B_pad * S * S,
            bytes_accessed=bytes_accessed),
    )(x, w_qkv, b_qkv)

    if B_pad != B:
        out = out[:B]
    return out[0] if squeeze else out


def _torch_style_linear_init(key, fan_in, shape):
    # Mimic torch.nn.Linear default init: U(-1/sqrt(fan_in), 1/sqrt(fan_in)).
    bound = 1.0 / jnp.sqrt(jnp.float32(fan_in))
    return jax.random.uniform(key, shape, jnp.float32, minval=-bound, maxval=bound)


def reference(x, wq, bq, wk, bk, wv, bv):
    q = x @ wq.T + bq
    k = x @ wk.T + bk
    v = x @ wv.T + bv
    s = (q @ k.T) / jnp.sqrt(jnp.float32(FEATURE_DIM))
    p = jax.nn.softmax(s, axis=1)
    return p @ v


if __name__ == "__main__":
    key = jax.random.PRNGKey(0)
    ks = jax.random.split(key, 9)

    x = jax.random.normal(ks[0], (SEQ_LEN, FEATURE_DIM), jnp.float32)

    wq = _torch_style_linear_init(ks[1], FEATURE_DIM, (FEATURE_DIM, FEATURE_DIM))
    bq = _torch_style_linear_init(ks[2], FEATURE_DIM, (FEATURE_DIM,))
    wk = _torch_style_linear_init(ks[3], FEATURE_DIM, (FEATURE_DIM, FEATURE_DIM))
    bk = _torch_style_linear_init(ks[4], FEATURE_DIM, (FEATURE_DIM,))
    wv = _torch_style_linear_init(ks[5], FEATURE_DIM, (FEATURE_DIM, FEATURE_DIM))
    bv = _torch_style_linear_init(ks[6], FEATURE_DIM, (FEATURE_DIM,))

    # One-time fused / pre-transposed / col-padded parameter preparation.
    w_qkv, b_qkv = jax.block_until_ready(prepare_params(wq, bq, wk, bk, wv, bv))

    # ---- 2-D case: matches the PyTorch module signature exactly. ----
    out = jax.block_until_ready(self_attention(x, w_qkv, b_qkv))
    ref = reference(x, wq, bq, wk, bk, wv, bv)
    assert out.shape == (SEQ_LEN, FEATURE_DIM)
    assert jnp.allclose(out, ref, atol=2e-5, rtol=2e-5), (
        f"max err {jnp.max(jnp.abs(out - ref))}")

    # ---- batched case: many sequences per gridded pallas_call (divides evenly). ----
    B = 4
    xb = jax.random.normal(ks[7], (B, SEQ_LEN, FEATURE_DIM), jnp.float32)
    outb = jax.block_until_ready(self_attention(xb, w_qkv, b_qkv))
    refb = jax.vmap(lambda xi: reference(xi, wq, bq, wk, bk, wv, bv))(xb)
    assert outb.shape == (B, SEQ_LEN, FEATURE_DIM)
    assert jnp.allclose(outb, refb, atol=2e-5, rtol=2e-5), (
        f"max err {jnp.max(jnp.abs(outb - refb))}")

    # ---- batched case exercising the B % TB tail-padding path. ----
    B2 = 5
    xc = jax.random.normal(ks[8], (B2, SEQ_LEN, FEATURE_DIM), jnp.float32)
    outc = jax.block_until_ready(self_attention(xc, w_qkv, b_qkv))
    refc = jax.vmap(lambda xi: reference(xi, wq, bq, wk, bk, wv, bv))(xc)
    assert outc.shape == (B2, SEQ_LEN, FEATURE_DIM)
    assert jnp.allclose(outc, refc, atol=2e-5, rtol=2e-5), (
        f"max err {jnp.max(jnp.abs(outc - refc))}")

    print("KERNEL_OK")
</pallas_src>

<mosaic_0001>
module attributes {stable_mosaic.version = 11 : i64} {
  func.func @fused_self_attention_kernel(%arg0: i32, %arg1: memref<1x8x50xf32, #tpu.memory_space<vmem>>, %arg2: memref<50x384xf32, #tpu.memory_space<vmem>>, %arg3: memref<1x384xf32, #tpu.memory_space<vmem>>, %arg4: memref<1x8x50xf32, #tpu.memory_space<vmem>>) attributes {dimension_semantics = [#tpu.dimension_semantics<parallel>], iteration_bounds = array<i64: 1>, scalar_prefetch = 0 : i64, scratch_operands = 0 : i64, tpu.core_type = #tpu.core_type<tc>, window_params = [{transform_indices = @transform_0, window_bounds = array<i64: 1, 8, 50>}, {pipeline_mode = #tpu.pipeline_mode<synchronous>, transform_indices = @transform_1, window_bounds = array<i64: 50, 384>}, {pipeline_mode = #tpu.pipeline_mode<synchronous>, transform_indices = @transform_2, window_bounds = array<i64: 1, 384>}, {transform_indices = @transform_3, window_bounds = array<i64: 1, 8, 50>}]} {
    %c0 = arith.constant 0 : index
    %c0_0 = arith.constant 0 : index
    %c0_1 = arith.constant 0 : index
    %0 = vector.load %arg1[%c0, %c0_0, %c0_1] : memref<1x8x50xf32, #tpu.memory_space<vmem>>, vector<1x8x50xf32>
    %1 = vector.shape_cast %0 : vector<1x8x50xf32> to vector<8x50xf32>
    %c0_2 = arith.constant 0 : index
    %c0_3 = arith.constant 0 : index
    %2 = vector.load %arg2[%c0_2, %c0_3] : memref<50x384xf32, #tpu.memory_space<vmem>>, vector<50x384xf32>
    %cst = arith.constant dense<0.000000e+00> : vector<8x384xf32>
    %3 = tpu.matmul %1, %2, %cst {dimension_numbers = #tpu.dot_dimension_numbers<[1], [0], [0], [1], [0, 0, 1, 1], [], []>} : vector<8x50xf32>, vector<50x384xf32>, vector<8x384xf32> -> vector<8x384xf32>
    %c0_4 = arith.constant 0 : index
    %c0_5 = arith.constant 0 : index
    %4 = vector.load %arg3[%c0_4, %c0_5] : memref<1x384xf32, #tpu.memory_space<vmem>>, vector<1x384xf32>
    %5 = vector.broadcast %4 : vector<1x384xf32> to vector<8x384xf32>
    %6 = arith.addf %3, %5 : vector<8x384xf32>
    %7 = vector.extract_strided_slice %6 {offsets = [0, 0], sizes = [8, 128], strides = [1, 1]} : vector<8x384xf32> to vector<8x128xf32>
    %8 = vector.shape_cast %7 : vector<8x128xf32> to vector<1x8x128xf32>
    %9 = vector.extract_strided_slice %6 {offsets = [0, 128], sizes = [8, 128], strides = [1, 1]} : vector<8x384xf32> to vector<8x128xf32>
    %10 = vector.shape_cast %9 : vector<8x128xf32> to vector<1x8x128xf32>
    %11 = vector.extract_strided_slice %6 {offsets = [0, 256], sizes = [8, 128], strides = [1, 1]} : vector<8x384xf32> to vector<8x128xf32>
    %12 = vector.shape_cast %11 : vector<8x128xf32> to vector<1x8x128xf32>
    %cst_6 = arith.constant dense<0.000000e+00> : vector<1x8x8xf32>
    %13 = tpu.matmul %8, %10, %cst_6 {dimension_numbers = #tpu.dot_dimension_numbers<[2], [2], [1], [1], [0, 0, 0, 1, 1, 1], [0], [0]>} : vector<1x8x128xf32>, vector<1x8x128xf32>, vector<1x8x8xf32> -> vector<1x8x8xf32>
    %cst_7 = arith.constant dense<0xFF800000> : vector<1x8xf32>
    %14 = vector.multi_reduction <maximumf>, %13, %cst_7 [2] : vector<1x8x8xf32> to vector<1x8xf32>
    %15 = vector.shape_cast %14 : vector<1x8xf32> to vector<1x8x1xf32>
    %16 = vector.broadcast %15 : vector<1x8x1xf32> to vector<1x8x8xf32>
    %17 = arith.subf %13, %16 : vector<1x8x8xf32>
    %18 = math.exp %17 : vector<1x8x8xf32>
    %cst_8 = arith.constant dense<0.000000e+00> : vector<1x8xf32>
    %19 = vector.multi_reduction <add>, %18, %cst_8 [2] : vector<1x8x8xf32> to vector<1x8xf32>
    %20 = vector.shape_cast %19 : vector<1x8xf32> to vector<1x8x1xf32>
    %21 = tpu.reciprocal %20 : vector<1x8x1xf32> -> vector<1x8x1xf32>
    %22 = vector.broadcast %21 : vector<1x8x1xf32> to vector<1x8x8xf32>
    %23 = arith.mulf %18, %22 : vector<1x8x8xf32>
    %cst_9 = arith.constant dense<0.000000e+00> : vector<1x8x128xf32>
    %24 = tpu.matmul %23, %12, %cst_9 {dimension_numbers = #tpu.dot_dimension_numbers<[2], [1], [1], [2], [0, 0, 0, 1, 1, 2], [0], [0]>} : vector<1x8x8xf32>, vector<1x8x128xf32>, vector<1x8x128xf32> -> vector<1x8x128xf32>
    %25 = vector.extract_strided_slice %24 {offsets = [0, 0, 0], sizes = [1, 8, 50], strides = [1, 1, 1]} : vector<1x8x128xf32> to vector<1x8x50xf32>
    %c0_10 = arith.constant 0 : index
    %c0_11 = arith.constant 0 : index
    %c0_12 = arith.constant 0 : index
    %26 = vector.load %arg4[%c0_10, %c0_11, %c0_12] : memref<1x8x50xf32, #tpu.memory_space<vmem>>, vector<1x8x50xf32>
    tpu.vector_store %arg4[%c0_10, %c0_11, %c0_12], %25 {strides = array<i32>} : memref<1x8x50xf32, #tpu.memory_space<vmem>>, vector<1x8x50xf32>,
    return
  }
  func.func @transform_0(%arg0: i32) -> (i32, i32, i32) {
    %c0_i32 = arith.constant 0 : i32
    %c0_i32_0 = arith.constant 0 : i32
    %c0_i32_1 = arith.constant 0 : i32
    return %arg0, %c0_i32, %c0_i32_0 : i32, i32, i32
  }
  func.func @transform_1(%arg0: i32) -> (i32, i32) {
    %c0_i32 = arith.constant 0 : i32
    %c0_i32_0 = arith.constant 0 : i32
    %c0_i32_1 = arith.constant 0 : i32
    return %c0_i32, %c0_i32_0 : i32, i32
  }
  func.func @transform_2(%arg0: i32) -> (i32, i32) {
    %c0_i32 = arith.constant 0 : i32
    %c0_i32_0 = arith.constant 0 : i32
    %c0_i32_1 = arith.constant 0 : i32
    return %c0_i32, %c0_i32_0 : i32, i32
  }
  func.func @transform_3(%arg0: i32) -> (i32, i32, i32) {
    %c0_i32 = arith.constant 0 : i32
    %c0_i32_0 = arith.constant 0 : i32
    %c0_i32_1 = arith.constant 0 : i32
    return %arg0, %c0_i32, %c0_i32_0 : i32, i32, i32
  }
}

</mosaic_0001>

<bundles_post_ra>
// kernel: self_attention.1
= control target key start
LH: loop header
LB: loop body
LE: loop exit
PB: predicated region body
PF: predicated region fallthrough
CT: control target
= control target key end

     0   :  { %8 = vsyncpa [#allocation3], 0  ;;  %s416_s0 = inlined_call_operand.hbm [shape: f32[1,8,50], index: 0, kind: input, shape index: {}]   ;;  %s417_s1 = inlined_call_operand.hbm [shape: f32[50,384], index: 1, kind: input, shape index: {}]   ;;  %s418_s2 = inlined_call_operand.hbm [shape: f32[1,384], index: 2, kind: input, shape index: {}]   ;;  %s419_s3 = inlined_call_operand.hbm [shape: f32[1,8,50], index: 3, kind: output, shape index: {}]  }
   0x1   :  { %9 = vsyncpa [#allocation6], 0  ;;  %s26_s14 = sshll.u32 %s417_s1, 4  ;;  %s27_s14 = int_to_ptr.hbm [resolvable:$true] %s26_s14 }
   0x2   :  { %10 = vsyncpa [#allocation4], 0  ;;  %s368_s15 = smov [#allocation5]   ;;  %s16_s19 = sshll.u32 %s416_s0, 4  ;;  %s17_s19 = int_to_ptr.hbm [resolvable:$true] %s16_s19 }
   0x3   :  { %s28_s16 = sshll.u32 %s368_s15, 4  ;;  %s369_s20 = smov 384   ;;  %s29_s16 = int_to_ptr.vmem [resolvable:$true] %s28_s16 }
   0x4   :  { %s370_s21 = smov 24   ;;  %s371_s22 = smov [#allocation2]  }
   0x5   :  { %34 = dma.hbm_to_vmem [thread:$0]  %s27_s14, 2688, %s29_s16, [#allocation6], %s369_s20, %s369_s20, %s370_s21  }
   0x6   :  { %s18_s23 = sshll.u32 %s371_s22, 4  ;;  %s40_s26 = sshll.u32 %s418_s2, 4  ;;  %s19_s23 = int_to_ptr.vmem [resolvable:$true] %s18_s23  ;;  %s41_s26 = int_to_ptr.hbm [resolvable:$true] %s40_s26 }
   0x7   :  { %21 = dma.hbm_to_vmem [thread:$0]  %s17_s19, 128, %s19_s23, [#allocation3]  }
   0x8   :  { %s372_s1 = smov [#allocation7]  }
   0x9   :  { %s42_s27 = sshll.u32 %s372_s1, 4  ;;  %s43_s27 = int_to_ptr.vmem [resolvable:$true] %s42_s27 }
   0xa   :  { %45 = dma.hbm_to_vmem [thread:$0]  %s41_s26, 48, %s43_s27, [#allocation6]  }
   0xb   :  { %362 = dma.done.wait [#allocation3], 128  }
   0xc   :  { %363 = vsyncadd [#allocation3], 4294967168 }
   0xd   :  { %364 = dma.done.wait [#allocation6], 2736  }
   0xe   :  { %365 = vsyncadd [#allocation6], 4294964560  ;;  %vm92_vm0 = vcmask 1041408   ;;  %v78_v0 = vld [vmem:[#allocation5 + $0x98] sm:$0x3]  ;;  %v75_v1 = vld [vmem:[#allocation5 + $0x80] sm:$0xff] }
   0xf   :  { %v77_v2 = vld [vmem:[#allocation5 + $0x90] sm:$0x3]  ;;  %251 = vmatpush.msk.msra.mxu1 %vm92_vm0, %v78_v0  ;;  %v74_v3 = vld [vmem:[#allocation5 + $0x78] sm:$0xff]  ;;  %v72_v4 = vld [vmem:[#allocation5 + $0x68] sm:$0xff]  ;;  %vm88_vm1 = vcmask 408576   ;;  %vm182_vm2 = vcmask 64512  }
  0x10   :  { %249 = vmatpush.msk.msra.mxu0 %vm92_vm0, %v77_v2  ;;  %v71_v5 = vld [vmem:[#allocation5 + $0x60] sm:$0xff]  ;;  %v69_v6 = vld [vmem:[#allocation5 + $0x50] sm:$0xff]  ;;  %v68_v7 = vld [vmem:[#allocation5 + $0x48] sm:$0xff]  ;;  %s373_s0 = smov [#allocation8]   ;;  %s238_s30 = sshll.u32 %s419_s3, 4  ;;  %s239_s30 = int_to_ptr.hbm [resolvable:$true] %s238_s30 }
  0x11   :  { %132 = vmatpush.msra.mxu1 %v75_v1  ;;  %v66_v8 = vld [vmem:[#allocation5 + $0x38] sm:$0xff]  ;;  %v65_v9 = vld [vmem:[#allocation5 + $0x30] sm:$0xff]  ;;  %v63_v10 = vld [vmem:[#allocation5 + $0x20] sm:$0xff]  ;;  %s236_s2 = sshll.u32 %s373_s0, 4  ;;  %s237_s2 = int_to_ptr.vmem [resolvable:$true] %s236_s2 }
  0x12   :  { %112 = vmatpush.msra.mxu0 %v74_v3  ;;  %v62_v11 = vld [vmem:[#allocation5 + $0x18] sm:$0xff]  ;;  %v60_v12 = vld [vmem:[#allocation5 + $0x8] sm:$0xff]  ;;  %v59_v13 = vld [vmem:[#allocation5] sm:$0xff] }
  0x13   :  { %133 = vmatpush.msra.mxu1 %v72_v4  ;;  %v58_v14 = vld [vmem:[#allocation2] sm:$0xff]  ;;  %v80_v15 = vld [vmem:[#allocation7] sm:$0x7]  ;;  %v79_v22 = vld [vmem:[#allocation5 + $0xa0] sm:$0x3] }
  0x14   :  { %113 = vmatpush.msra.mxu0 %v71_v5  ;;  %v83_v16 = vperm.slane %v80_v15, 1  ;;  %v82_v17 = vperm.slane %v80_v15, 0  ;;  %v76_v23 = vld [vmem:[#allocation5 + $0x88] sm:$0xff]  ;;  %253 = vmatpush.msk.msra.mxu2 %vm92_vm0, %v79_v22  ;;  %v73_v24 = vld [vmem:[#allocation5 + $0x70] sm:$0xff]  ;;  %v70_v25 = vld [vmem:[#allocation5 + $0x58] sm:$0xff]  ;;  %v84_v36 = vperm.slane %v80_v15, 2 }
  0x15   :  { %134 = vmatpush.msra.mxu1 %v69_v6  ;;  %v67_v28 = vld [vmem:[#allocation5 + $0x40] sm:$0xff]  ;;  %v64_v29 = vld [vmem:[#allocation5 + $0x28] sm:$0xff]  ;;  %v61_v30 = vld [vmem:[#allocation5 + $0x10] sm:$0xff] }
  0x16   :  { %114 = vmatpush.msra.mxu0 %v68_v7  ;;  %152 = vmatpush.msra.mxu2 %v76_v23 }
  0x17   :  { %135 = vmatpush.msra.mxu1 %v66_v8 }
  0x18   :  { %115 = vmatpush.msra.mxu0 %v65_v9  ;;  %153 = vmatpush.msra.mxu2 %v73_v24 }
  0x19   :  { %136 = vmatpush.msra.mxu1 %v63_v10 }
  0x1a   :  { %116 = vmatpush.msra.mxu0 %v62_v11  ;;  %154 = vmatpush.msra.mxu2 %v70_v25 }
  0x1b   :  { %137 = vmatpush.msra.mxu1 %v60_v12 }
  0x1c   :  { %117 = vmatpush.msra.mxu0 %v59_v13  ;;  %252 = vmatmul.msk.f32.vlgmr.msra.gmra.mxu1 %vm88_vm1, %v58_v14 }
  0x1d   :  { %250 = vmatmul.msk.f32.vlgmr.msra.gmra.mxu0 %vm88_vm1, %v58_v14  ;;  %155 = vmatpush.msra.mxu2 %v67_v28 }
  0x1f   :  { %156 = vmatpush.msra.mxu2 %v64_v29 }
  0x21   :  { %157 = vmatpush.msra.mxu2 %v61_v30 }
  0x22   :  { %254 = vmatmul.msk.f32.vlgmr.msra.gmra.mxu2 %vm88_vm1, %v58_v14 }
  0x99   :  { %v139_v18 = vpop.f32.mrf.mxu1 }
  0x9a   :  { %v119_v19 = vpop.f32.mrf.mxu0  ;;  %v140_v20 = vadd.f32 %v139_v18, %v83_v16 }
  0x9b   :  { %v120_v21 = vadd.f32 %v119_v19, %v82_v17 }
  0x9c   :  { %177 = vmatpush.xpose.msra.mxu3 %v140_v20 }
  0x9f   :  { %178 = vmatmul.f32.vlgmr.msra.gmra.mxu3 %v120_v21 }
  0xa5   :  { %v159_v37 = vpop.f32.mrf.mxu2 }
  0xa6   :  { %v160_v38 = vadd.f32 %v159_v37, %v84_v36 }
  0xa8   :  { %225 = vmatpush.msrb.mxu3 %v160_v38 }
 0x122   :  { %v179_v26 = vpop.f32.mrf.mxu3 }
 0x123   :  { %v183_v27 = vsel %vm182_vm2, %v179_v26, -inf }
 0x124   :  { %184 = vmax.xlane.f32.xlu0 %v183_v27 }
 0x197   :  { %v185_v31 = vpop.xlane.xlu0 %184 }
 0x198   :  { %v186_v32 = vsub.f32 %v179_v26, %v185_v31 }
 0x19a   :  { %v187_v33 = vmul.f32 1.442695, %v186_v32 }
 0x19c   :  { %262 = vpow2.f32 %v187_v33 }
 0x1a2   :  { %v263_v34 = vpop.eup %262 }
 0x1a3   :  { %v189_v35 = vsel %vm182_vm2, %v263_v34, 0.0 }
 0x1a4   :  { %190 = vadd.xlane.f32.xlu0 %v189_v35 }
 0x217   :  { %v191_v39 = vpop.xlane.xlu0 %190 }
 0x218   :  { %264 = vrcp.f32 %v191_v39  ;;  %v203_v43 = vand.u32 2147483648, %v191_v39  ;;  %v201_v45 = vand.u32 2147483647, %v191_v39  ;;  %vm197_vm4 = vweird.f32 %v191_v39 }
 0x21a   :  { %v204_v47 = vor.u32 1.1754944e-38, %v203_v43  ;;  %vm202_vm6 = vcmp.eq.f32.partialorder %v201_v45, 8.507059e+37 }
 0x21e   :  { %v265_v40 = vpop.eup %264 }
 0x21f   :  { %v193_v41 = vmul.f32 %v265_v40, %v191_v39  ;;  %vm198_vm3 = vweird.f32 %v265_v40 }
 0x220   :  { %vm199_vm5 = vmor %vm197_vm4, %vm198_vm3 }
 0x221   :  { %v194_v42 = vsub.f32 1.0, %v193_v41 }
 0x223   :  { %v195_v44 = vmul.f32 %v265_v40, %v194_v42 }
 0x225   :  { %v196_v46 = vadd.f32 %v265_v40, %v195_v44 }
 0x227   :  { %v200_v48 = vsel %vm199_vm5, %v265_v40, %v196_v46 }
 0x228   :  { %v205_v49 = vsel %vm202_vm6, %v204_v47, %v200_v48 }
 0x229   :  { %v206_v50 = vmul.f32 %v263_v34, %v205_v49 }
 0x22b   :  { %255 = vmatmul.msk.f32.vlgmr.msrb.gmra.mxu3 %vm182_vm2, %v206_v50 }
 0x2ae   :  { %v227_v51 = vpop.f32.mrf.mxu3 }
 0x2af   :  { %230 = vst.msk [vmem:[#allocation8] sm:$0xff] %vm88_vm1, %v227_v51 }
 0x2b0   :  { %241 = dma.vmem_to_hbm [thread:$0]  %s237_s2, 128, %s239_s30, [#allocation4]  }
 0x2b1   :  { %366 = dma.done.wait [#allocation4], 128  }
 0x2b2   :  { %367 = vsyncadd [#allocation4], 4294967168 }
 0x2b3   :  { %246 = vsyncpa [#allocation3], 1 }
 0x2b4   :  { %247 = vsyncpa [#allocation6], 1 }
 0x2b5   :  { %248 = vsyncpa [#allocation4], 1 }

</bundles_post_ra>
